<compile_context>
chip_gen: v7x
topology: tpu7x:2x2x1
jax: 0.10.0
libtpu: 0.0.40
codegen_flags: <defaults>
</compile_context>

<pallas_src>
import jax
import jax.numpy as jnp
from jax.experimental import pallas as pl
from jax.experimental.pallas import tpu as pltpu


def _conv3x3_kernel(x_ref, w_ref, b_ref, o_ref):
    # x_ref : (Nb, Cin, H, W)        NCHW block for a batch tile
    # w_ref : (3*Cin*W, Cout*W)      resident banded weight (K order = kh, ci, wi)
    # b_ref : (1, Cout*W)            bias row, co-major / w-minor
    # o_ref : (Nb, H, Cout*W)        lane-dense output block
    nb, cin, H, W = x_ref.shape
    m = nb * H

    x = x_ref[...]                                           # tiny VMEM load

    # Merge the Cin planes onto the lane axis: x2d[n*H + h, ci*W + wi].
    planes = [x[:, ci, :, :].reshape(m, W) for ci in range(cin)]   # free reshapes
    x2d = planes[0] if cin == 1 else jnp.concatenate(planes, axis=1)   # (m, Cin*W)

    # Per-image row index for the H-halo masks (rows are merged (n, h)).
    h_idx = jax.lax.broadcasted_iota(jnp.int32, (m, cin * W), 0) % H
    has_prev = h_idx != 0            # a row h-1 exists within this image
    has_next = h_idx != (H - 1)      # a row h+1 exists within this image

    # kh taps via XLU rotations + boundary masks (no (H+2, W) concatenate).
    tap_prev = jnp.where(has_prev, pltpu.roll(x2d, 1, 0), 0.0)       # x[h-1] (kh=0)
    tap_next = jnp.where(has_next, pltpu.roll(x2d, m - 1, 0), 0.0)   # x[h+1] (kh=2)

    # LHS patch, K axis ordered (kh, ci, wi) to match w_ref's row order.
    patch = jnp.concatenate([tap_prev, x2d, tap_next], axis=1)       # (m, 3*Cin*W)

    out = jnp.dot(patch, w_ref[...], preferred_element_type=jnp.float32)
    out = out + b_ref[...]                                           # broadcast bias
    o_ref[...] = out.reshape(nb, H, -1).astype(o_ref.dtype)


def conv2dl_forward(x_nchw, weight, bias):
    """Forward pass equivalent to nn.Conv2d(in_ch, out_ch, 3, padding=1, bias=True).

    x_nchw : (N, Cin, H, W)    float32
    weight : (Cout, Cin, 3, 3) float32  (PyTorch OIHW layout)
    bias   : (Cout,)           float32
    returns: (N, Cout, H, W)   float32
    """
    N, cin, H, W = x_nchw.shape
    cout = weight.shape[0]

    # --- one-time weight preprocessing (tiny) -------------------------------
    # Banded weight with Cin fused into K and a co-major output lane order:
    #   w_big[(kh*Cin + ci)*W + wi, co*W + wo] = weight[co, ci, kh, wi - wo + 1]
    #     if 0 <= wi - wo + 1 < 3 else 0
    # This embeds the kw taps AND the zero padding along W into the matmul.
    wi_idx = jnp.arange(W)[:, None]
    wo_idx = jnp.arange(W)[None, :]
    shift = jnp.stack([(wi_idx == wo_idx + kw - 1) for kw in range(3)],
                      axis=0).astype(x_nchw.dtype)                   # (3, W, W) [kw, wi, wo]
    w_t = jnp.transpose(weight, (1, 2, 3, 0))                        # (Cin, 3, 3, Cout) [ci,kh,kw,co]
    w_big = jnp.einsum('xvw,ihxc->hivcw', shift, w_t)                # (3, Cin, W, Cout, W)
    w_big = w_big.reshape(3 * cin * W, cout * W)

    # Bias row matching the co-major / w-minor output lane order.
    bias_row = jnp.repeat(bias, W).reshape(1, cout * W)

    # Batch images per grid step so M = nb*H approaches the MXU height.
    target_m = 256
    nb = max(1, min(N, target_m // max(H, 1)))
    while N % nb:
        nb -= 1
    grid = (N // nb,)

    out_flat = pl.pallas_call(
        _conv3x3_kernel,
        out_shape=jax.ShapeDtypeStruct((N, H, cout * W), x_nchw.dtype),
        grid_spec=pltpu.PrefetchScalarGridSpec(
            num_scalar_prefetch=0,
            grid=grid,
            in_specs=[
                # NCHW batch tile straight from the input (no wrapper relayout).
                pl.BlockSpec((nb, cin, H, W), lambda b: (b, 0, 0, 0)),
                # Resident banded weight: constant index_map -> DMA'd once.
                pl.BlockSpec((3 * cin * W, cout * W), lambda b: (0, 0)),
                # Bias row, VMEM-resident.
                pl.BlockSpec((1, cout * W), lambda b: (0, 0)),
            ],
            # Lane-dense output block (last dim = Cout*W).
            out_specs=pl.BlockSpec((nb, H, cout * W), lambda b: (b, 0, 0)),
        ),
        compiler_params=pltpu.CompilerParams(
            dimension_semantics=("parallel",),
        ),
    )(x_nchw, w_big, bias_row)

    # NCHW restore: with co-major lanes, W stays contiguous — this transpose
    # only permutes outer/sublane dims (cheap for XLA).
    out = out_flat.reshape(N, H, cout, W)
    return jnp.transpose(out, (0, 2, 1, 3))


if __name__ == "__main__":
    key = jax.random.PRNGKey(0)
    kx, kw, kb = jax.random.split(key, 3)

    N, in_ch, out_ch, H, W = 2, 4, 8, 16, 16

    x = jax.random.normal(kx, (N, in_ch, H, W), dtype=jnp.float32)

    # Deterministic param init mirroring nn.Conv2d defaults (uniform in
    # +/- 1/sqrt(fan_in), fan_in = in_ch * 3 * 3).
    fan_in = in_ch * 3 * 3
    bound = 1.0 / jnp.sqrt(jnp.float32(fan_in))
    weight = jax.random.uniform(kw, (out_ch, in_ch, 3, 3),
                                dtype=jnp.float32, minval=-bound, maxval=bound)
    bias = jax.random.uniform(kb, (out_ch,),
                              dtype=jnp.float32, minval=-bound, maxval=bound)

    out = conv2dl_forward(x, weight, bias)
    out = jax.block_until_ready(out)

    # Correctness check against XLA's conv (same semantics as PyTorch Conv2d).
    ref = jax.lax.conv_general_dilated(
        x, weight, window_strides=(1, 1), padding=((1, 1), (1, 1)),
        dimension_numbers=("NCHW", "OIHW", "NCHW"))
    ref = ref + bias.reshape(1, out_ch, 1, 1)
    assert out.shape == (N, out_ch, H, W)
    assert jnp.allclose(out, ref, atol=1e-4, rtol=1e-4)

    print("KERNEL_OK")
</pallas_src>

<mosaic_0001>
module attributes {stable_mosaic.version = 11 : i64} {
  func.func @_conv3x3_kernel(%arg0: i32, %arg1: memref<2x4x16x16xf32, #tpu.memory_space<vmem>>, %arg2: memref<192x128xf32, #tpu.memory_space<vmem>>, %arg3: memref<1x128xf32, #tpu.memory_space<vmem>>, %arg4: memref<2x16x128xf32, #tpu.memory_space<vmem>>) attributes {dimension_semantics = [#tpu.dimension_semantics<parallel>], iteration_bounds = array<i64: 1>, scalar_prefetch = 0 : i64, scratch_operands = 0 : i64, tpu.core_type = #tpu.core_type<tc>, window_params = [{transform_indices = @transform_0, window_bounds = array<i64: 2, 4, 16, 16>}, {pipeline_mode = #tpu.pipeline_mode<synchronous>, transform_indices = @transform_1, window_bounds = array<i64: 192, 128>}, {pipeline_mode = #tpu.pipeline_mode<synchronous>, transform_indices = @transform_2, window_bounds = array<i64: 1, 128>}, {transform_indices = @transform_3, window_bounds = array<i64: 2, 16, 128>}]} {
    %c0 = arith.constant 0 : index
    %c0_0 = arith.constant 0 : index
    %c0_1 = arith.constant 0 : index
    %c0_2 = arith.constant 0 : index
    %0 = vector.load %arg1[%c0, %c0_0, %c0_1, %c0_2] : memref<2x4x16x16xf32, #tpu.memory_space<vmem>>, vector<2x4x16x16xf32>
    %1 = vector.extract_strided_slice %0 {offsets = [0, 0, 0, 0], sizes = [2, 1, 16, 16], strides = [1, 1, 1, 1]} : vector<2x4x16x16xf32> to vector<2x1x16x16xf32>
    %2 = vector.shape_cast %1 : vector<2x1x16x16xf32> to vector<2x16x16xf32>
    %3 = vector.shape_cast %2 : vector<2x16x16xf32> to vector<32x16xf32>
    %4 = vector.extract_strided_slice %0 {offsets = [0, 1, 0, 0], sizes = [2, 1, 16, 16], strides = [1, 1, 1, 1]} : vector<2x4x16x16xf32> to vector<2x1x16x16xf32>
    %5 = vector.shape_cast %4 : vector<2x1x16x16xf32> to vector<2x16x16xf32>
    %6 = vector.shape_cast %5 : vector<2x16x16xf32> to vector<32x16xf32>
    %7 = vector.extract_strided_slice %0 {offsets = [0, 2, 0, 0], sizes = [2, 1, 16, 16], strides = [1, 1, 1, 1]} : vector<2x4x16x16xf32> to vector<2x1x16x16xf32>
    %8 = vector.shape_cast %7 : vector<2x1x16x16xf32> to vector<2x16x16xf32>
    %9 = vector.shape_cast %8 : vector<2x16x16xf32> to vector<32x16xf32>
    %10 = vector.extract_strided_slice %0 {offsets = [0, 3, 0, 0], sizes = [2, 1, 16, 16], strides = [1, 1, 1, 1]} : vector<2x4x16x16xf32> to vector<2x1x16x16xf32>
    %11 = vector.shape_cast %10 : vector<2x1x16x16xf32> to vector<2x16x16xf32>
    %12 = vector.shape_cast %11 : vector<2x16x16xf32> to vector<32x16xf32>
    %13 = tpu.concatenate %3, %6, %9, %12 in 1 : vector<32x16xf32>, vector<32x16xf32>, vector<32x16xf32>, vector<32x16xf32> -> vector<32x64xf32>
    %14 = tpu.iota {dimensions = array<i32: 0>} : vector<32x64xi32>
    %c16_i32 = arith.constant 16 : i32
    %c0_i32 = arith.constant 0 : i32
    %15 = arith.cmpi eq, %c16_i32, %c0_i32 : i32
    %c1_i32 = arith.constant 1 : i32
    %16 = arith.select %15, %c1_i32, %c16_i32 : i32
    %17 = vector.broadcast %16 : i32 to vector<32x64xi32>
    %18 = arith.remsi %14, %17 : vector<32x64xi32>
    %c0_i32_3 = arith.constant 0 : i32
    %19 = vector.broadcast %c0_i32_3 : i32 to vector<32x64xi32>
    %20 = arith.cmpi ne, %18, %19 : vector<32x64xi32>
    %c0_i32_4 = arith.constant 0 : i32
    %21 = vector.broadcast %c0_i32_4 : i32 to vector<32x64xi32>
    %22 = arith.cmpi slt, %18, %21 : vector<32x64xi32>
    %c0_i32_5 = arith.constant 0 : i32
    %23 = arith.cmpi slt, %16, %c0_i32_5 : i32
    %24 = vector.broadcast %23 : i1 to vector<32x64xi1>
    %25 = vector.broadcast %24 : vector<32x64xi1> to vector<32x64xi1>
    %26 = arith.xori %22, %25 : vector<32x64xi1>
    %27 = arith.andi %26, %20 : vector<32x64xi1>
    %28 = vector.broadcast %16 : i32 to vector<32x64xi32>
    %29 = arith.addi %18, %28 : vector<32x64xi32>
    %30 = arith.select %27, %29, %18 : vector<32x64xi1>, vector<32x64xi32>
    %c0_i32_6 = arith.constant 0 : i32
    %31 = vector.broadcast %c0_i32_6 : i32 to vector<32x64xi32>
    %32 = arith.cmpi ne, %30, %31 : vector<32x64xi32>
    %c15_i32 = arith.constant 15 : i32
    %33 = vector.broadcast %c15_i32 : i32 to vector<32x64xi32>
    %34 = arith.cmpi ne, %30, %33 : vector<32x64xi32>
    %c1_i32_7 = arith.constant 1 : i32
    %35 = tpu.dynamic_rotate %13 by %c1_i32_7 dim 0 : vector<32x64xf32>, i32 -> vector<32x64xf32>
    %cst = arith.constant 0.000000e+00 : f32
    %36 = vector.broadcast %cst : f32 to vector<32x64xf32>
    %37 = arith.select %32, %35, %36 : vector<32x64xi1>, vector<32x64xf32>
    %c31_i32 = arith.constant 31 : i32
    %38 = tpu.dynamic_rotate %13 by %c31_i32 dim 0 : vector<32x64xf32>, i32 -> vector<32x64xf32>
    %cst_8 = arith.constant 0.000000e+00 : f32
    %39 = vector.broadcast %cst_8 : f32 to vector<32x64xf32>
    %40 = arith.select %34, %38, %39 : vector<32x64xi1>, vector<32x64xf32>
    %41 = tpu.concatenate %37, %13, %40 in 1 : vector<32x64xf32>, vector<32x64xf32>, vector<32x64xf32> -> vector<32x192xf32>
    %c0_9 = arith.constant 0 : index
    %c0_10 = arith.constant 0 : index
    %42 = vector.load %arg2[%c0_9, %c0_10] : memref<192x128xf32, #tpu.memory_space<vmem>>, vector<192x128xf32>
    %cst_11 = arith.constant dense<0.000000e+00> : vector<32x128xf32>
    %43 = tpu.matmul %41, %42, %cst_11 {dimension_numbers = #tpu.dot_dimension_numbers<[1], [0], [0], [1], [0, 0, 1, 1], [], []>} : vector<32x192xf32>, vector<192x128xf32>, vector<32x128xf32> -> vector<32x128xf32>
    %c0_12 = arith.constant 0 : index
    %c0_13 = arith.constant 0 : index
    %44 = vector.load %arg3[%c0_12, %c0_13] : memref<1x128xf32, #tpu.memory_space<vmem>>, vector<1x128xf32>
    %45 = vector.broadcast %44 : vector<1x128xf32> to vector<32x128xf32>
    %46 = arith.addf %43, %45 : vector<32x128xf32>
    %47 = vector.shape_cast %46 : vector<32x128xf32> to vector<2x16x128xf32>
    %c0_14 = arith.constant 0 : index
    %c0_15 = arith.constant 0 : index
    %c0_16 = arith.constant 0 : index
    %48 = vector.load %arg4[%c0_14, %c0_15, %c0_16] : memref<2x16x128xf32, #tpu.memory_space<vmem>>, vector<2x16x128xf32>
    tpu.vector_store %arg4[%c0_14, %c0_15, %c0_16], %47 {strides = array<i32>} : memref<2x16x128xf32, #tpu.memory_space<vmem>>, vector<2x16x128xf32>,
    return
  }
  func.func @transform_0(%arg0: i32) -> (i32, i32, i32, i32) {
    %c0_i32 = arith.constant 0 : i32
    %c0_i32_0 = arith.constant 0 : i32
    %c0_i32_1 = arith.constant 0 : i32
    %c0_i32_2 = arith.constant 0 : i32
    return %arg0, %c0_i32, %c0_i32_0, %c0_i32_1 : i32, i32, i32, i32
  }
  func.func @transform_1(%arg0: i32) -> (i32, i32) {
    %c0_i32 = arith.constant 0 : i32
    %c0_i32_0 = arith.constant 0 : i32
    %c0_i32_1 = arith.constant 0 : i32
    return %c0_i32, %c0_i32_0 : i32, i32
  }
  func.func @transform_2(%arg0: i32) -> (i32, i32) {
    %c0_i32 = arith.constant 0 : i32
    %c0_i32_0 = arith.constant 0 : i32
    %c0_i32_1 = arith.constant 0 : i32
    return %c0_i32, %c0_i32_0 : i32, i32
  }
  func.func @transform_3(%arg0: i32) -> (i32, i32, i32) {
    %c0_i32 = arith.constant 0 : i32
    %c0_i32_0 = arith.constant 0 : i32
    %c0_i32_1 = arith.constant 0 : i32
    return %arg0, %c0_i32, %c0_i32_0 : i32, i32, i32
  }
}

</mosaic_0001>

<bundles_post_ra>
// kernel: tpu_custom_call.1
= control target key start
LH: loop header
LB: loop body
LE: loop exit
PB: predicated region body
PF: predicated region fallthrough
CT: control target
= control target key end

     0   :  { %8 = vsyncpa [#allocation3], 0  ;;  %s717_s0 = inlined_call_operand.hbm [shape: f32[2,4,16,16], index: 0, kind: input, shape index: {}]   ;;  %s718_s1 = inlined_call_operand.hbm [shape: f32[192,128], index: 1, kind: input, shape index: {}]   ;;  %s719_s2 = inlined_call_operand.vmem [shape: f32[1,128], index: 2, kind: input, shape index: {}]   ;;  %s720_s3 = inlined_call_operand.hbm [shape: f32[2,16,128], index: 3, kind: output, shape index: {}]  }
   0x1   :  { %9 = vsyncpa [#allocation6], 0 }
   0x2   :  { %10 = vsyncpa [#allocation4], 0  ;;  %s537_s12 = smov [#allocation2]   ;;  %s465_s16 = scalar_lea.hbm %s717_s0, 2048 }
   0x3   :  { %s16_s13 = sshll.u32 %s537_s12, 4  ;;  %p466_p0 = scmp.ne.s32.totalorder %s717_s0, %s465_s16  ;;  %s17_s13 = int_to_ptr.vmem [resolvable:$true] %s16_s13 }
   0x4   :  { %p469_p1 = scmp.lt.u32.totalorder %s465_s16, %s717_s0 }
   0x6   :  { %p471_p2 = pnand %p469_p1, %p466_p0 }
   0x8   :  { %474 = shalt.err (!%p471_p2)
}
   0x9   :  { %s475_s21 = scalar_lea.vmem %s17_s13, 2048  ;;  %p480_p4 = scmp.lt.s32.totalorder %s17_s13, %s17_s13 }
   0xa   :  { %p476_p3 = scmp.ne.s32.totalorder %s17_s13, %s475_s21  ;;  %p481_p5 = scmp.lt.s32.totalorder %s475_s21, %s475_s21 }
   0xc   :  { %p482_p6 = por %p481_p5, %p480_p4 }
   0xe   :  { %p483_p7 = pnand %p482_p6, %p476_p3 }
  0x10   :  { %486 = shalt.err (!%p483_p7)
}
  0x11   :  { %s538_s22 = smov 128   ;;  %s539_s23 = smov 8  }
  0x12   :  { %22 = dma.hbm_to_vmem [thread:$0]  %s717_s0, 2048, %s17_s13, [#allocation3], %s538_s22, %s538_s22, %s539_s23  }
  0x13   :  { %s540_s26 = smov [#allocation5]   ;;  %s487_s30 = scalar_lea.hbm %s718_s1, 3072 }
  0x14   :  { %s28_s27 = sshll.u32 %s540_s26, 4  ;;  %p488_p8 = scmp.ne.s32.totalorder %s718_s1, %s487_s30  ;;  %s29_s27 = int_to_ptr.vmem [resolvable:$true] %s28_s27 }
  0x15   :  { %p491_p9 = scmp.lt.u32.totalorder %s487_s30, %s718_s1 }
  0x17   :  { %p493_p10 = pnand %p491_p9, %p488_p8 }
  0x19   :  { %496 = shalt.err (!%p493_p10)
}
  0x1a   :  { %s497_s8 = scalar_lea.vmem %s29_s27, 3072  ;;  %p502_p12 = scmp.lt.s32.totalorder %s29_s27, %s29_s27 }
  0x1b   :  { %p498_p11 = scmp.ne.s32.totalorder %s29_s27, %s497_s8  ;;  %p503_p13 = scmp.lt.s32.totalorder %s497_s8, %s497_s8 }
  0x1d   :  { %p504_p0 = por %p503_p13, %p502_p12 }
  0x1f   :  { %p505_p1 = pnand %p504_p0, %p498_p11 }
  0x21   :  { %508 = shalt.err (!%p505_p1)
}
  0x22   :  { %34 = dma.hbm_to_vmem [thread:$0]  %s718_s1, 3072, %s29_s27, [#allocation6], %s538_s22, %s538_s22, %s539_s23  }
  0x23   :  { %531 = dma.done.wait [#allocation3], 2048  }
  0x24   :  { %532 = vsyncadd [#allocation3], 4294965248 }
  0x25   :  { %533 = dma.done.wait [#allocation6], 3072  }
  0x26   :  { %534 = vsyncadd [#allocation6], 4294964224  ;;  %v47_v0 = vld [vmem:[#allocation2 + $0x20] sm:$0xff]  ;;  %v45_v1 = vld [vmem:[#allocation2 + $0x10] sm:$0xff]  ;;  %s541_s10 = smov 32   ;;  %s542_s11 = smov 16   ;;  %v122_v53 = vlaneseq }
  0x27   :  { %79 = vrot.lane.b32.xlu1 %v47_v0, %s541_s10  ;;  %63 = vrot.lane.b32.xlu0 %v45_v1, %s542_s11  ;;  %v55_v2 = vld [vmem:[#allocation2 + $0x60] sm:$0xff]  ;;  %v53_v3 = vld [vmem:[#allocation2 + $0x50] sm:$0xff]  ;;  %s543_s12 = smov 48   ;;  %v54_v6 = vld [vmem:[#allocation2 + $0x58] sm:$0xff]  ;;  %v544_v13 = vmov 0.0|0.0   ;;  %vm107_vm0 = vcmask 130048  }
  0x28   :  { %v57_v4 = vld [vmem:[#allocation2 + $0x70] sm:$0xff]  ;;  %v46_v7 = vld [vmem:[#allocation2 + $0x18] sm:$0xff]  ;;  %v230_v8 = vld [vmem:[#allocation5] sm:$0xff]  ;;  %385 = vmatprep.subr.bf16.mxu0 %v544_v13  ;;  %421 = vmatprep.subr.bf16.mxu1 %v544_v13  ;;  %vm112_vm1 = vcmask 261120   ;;  %vm117_vm2 = vcmask 392192   ;;  %v631_v58 = vshrl.u32 %v122_v53, 7 }
  0x29   :  { %v49_v5 = vld [vmem:[#allocation2 + $0x30] sm:$0xff]  ;;  %v231_v9 = vld [vmem:[#allocation5 + $0x8] sm:$0xff]  ;;  %v233_v15 = vld [vmem:[#allocation5 + $0x18] sm:$0xff]  ;;  %s545_s1 = smov 64   ;;  %vm225_vm4 = vcmask 523264   ;;  %s546_s15 = smov [#allocation7]  }
  0x2a   :  { %v232_v10 = vld [vmem:[#allocation5 + $0x10] sm:$0xff]  ;;  %v56_v11 = vld [vmem:[#allocation2 + $0x68] sm:$0xff]  ;;  %v386_v14 = vpack.c.bf16 %v231_v9, %v230_v8  ;;  %v234_v17 = vld [vmem:[#allocation5 + $0x20] sm:$0xff]  ;;  %vm200_vm3 = vcmp.lt.s32.totalorder %v631_v58, 7  ;;  %vm187_vm5 = vcmp.lt.s32.totalorder %v631_v58, 1  ;;  %s367_s16 = sshll.u32 %s546_s15, 4  ;;  %s368_s16 = int_to_ptr.vmem [resolvable:$true] %s367_s16 }
  0x2b   :  { %83 = vrot.lane.b32.xlu1 %v55_v2, %s541_s10  ;;  %67 = vrot.lane.b32.xlu0 %v53_v3, %s542_s11  ;;  %v48_v12 = vld [vmem:[#allocation2 + $0x28] sm:$0xff]  ;;  %v389_v16 = vpack.c.bf16 %v233_v15, %v232_v10  ;;  %v58_v19 = vld [vmem:[#allocation2 + $0x78] sm:$0xff]  ;;  %v236_v22 = vld [vmem:[#allocation5 + $0x30] sm:$0xff]  ;;  %v125_v2 = vadd.s32 16, %v631_v58  ;;  %p514_p3 = scmp.lt.s32.totalorder %s368_s16, %s368_s16 }
  0x2c   :  { %387 = vmatpush1.bf16.msra.mxu0 %v386_v14  ;;  %433 = vmatpush1.bf16.msra.mxu1 %v386_v14  ;;  %v235_v18 = vld [vmem:[#allocation5 + $0x28] sm:$0xff]  ;;  %v50_v20 = vld [vmem:[#allocation2 + $0x38] sm:$0xff]  ;;  %v238_v25 = vld [vmem:[#allocation5 + $0x40] sm:$0xff] }
  0x2d   :  { %388 = vmatprep.subr.bf16.mxu0 %v544_v13  ;;  %422 = vmatprep.subr.bf16.mxu1 %v544_v13  ;;  %v392_v21 = vpack.c.bf16 %v235_v18, %v234_v17  ;;  %v237_v23 = vld [vmem:[#allocation5 + $0x38] sm:$0xff]  ;;  %v239_v26 = vld [vmem:[#allocation5 + $0x48] sm:$0xff]  ;;  %v240_v28 = vld [vmem:[#allocation5 + $0x50] sm:$0xff]  ;;  %v145_v8 = vand.u32 15, %v125_v2 }
  0x2e   :  { %v395_v24 = vpack.c.bf16 %v237_v23, %v236_v22  ;;  %v398_v27 = vpack.c.bf16 %v239_v26, %v238_v25  ;;  %v241_v29 = vld [vmem:[#allocation5 + $0x58] sm:$0xff]  ;;  %v242_v31 = vld [vmem:[#allocation5 + $0x60] sm:$0xff]  ;;  %v243_v32 = vld [vmem:[#allocation5 + $0x68] sm:$0xff] }
  0x2f   :  { %99 = vrot.lane.b32.xlu1 %v57_v4, %s543_s12  ;;  %95 = vrot.lane.b32.xlu0 %v49_v5, %s543_s12  ;;  %v401_v30 = vpack.c.bf16 %v241_v29, %v240_v28  ;;  %v404_v33 = vpack.c.bf16 %v243_v32, %v242_v31  ;;  %v244_v34 = vld [vmem:[#allocation5 + $0x70] sm:$0xff]  ;;  %v245_v35 = vld [vmem:[#allocation5 + $0x78] sm:$0xff]  ;;  %v246_v37 = vld [vmem:[#allocation5 + $0x80] sm:$0xff]  ;;  %v124_v5 = vadd.s32 8, %v631_v58  ;;  %vm650_vm7 = vcmp.ne.s32.totalorder %v145_v8, 0 }
  0x30   :  { %390 = vmatpush1.bf16.msra.mxu0 %v389_v16  ;;  %434 = vmatpush1.bf16.msra.mxu1 %v389_v16  ;;  %v407_v36 = vpack.c.bf16 %v245_v35, %v244_v34  ;;  %v247_v38 = vld [vmem:[#allocation5 + $0x88] sm:$0xff]  ;;  %v248_v40 = vld [vmem:[#allocation5 + $0x90] sm:$0xff]  ;;  %v249_v41 = vld [vmem:[#allocation5 + $0x98] sm:$0xff] }
  0x31   :  { %391 = vmatprep.subr.bf16.mxu0 %v544_v13  ;;  %423 = vmatprep.subr.bf16.mxu1 %v544_v13  ;;  %v410_v39 = vpack.c.bf16 %v247_v38, %v246_v37  ;;  %v413_v42 = vpack.c.bf16 %v249_v41, %v248_v40  ;;  %v250_v43 = vld [vmem:[#allocation5 + $0xa0] sm:$0xff]  ;;  %v251_v44 = vld [vmem:[#allocation5 + $0xa8] sm:$0xff]  ;;  %v252_v46 = vld [vmem:[#allocation5 + $0xb0] sm:$0xff] }
  0x32   :  { %v416_v45 = vpack.c.bf16 %v251_v44, %v250_v43  ;;  %v253_v47 = vld [vmem:[#allocation5 + $0xb8] sm:$0xff]  ;;  %v43_v51 = vld [vmem:[#allocation2] sm:$0xff]  ;;  %v52_v9 = vld [vmem:[#allocation2 + $0x48] sm:$0xff] }
  0x33   :  { %69 = vrot.lane.b32.xlu1 %v54_v6, %s542_s11  ;;  %65 = vrot.lane.b32.xlu0 %v46_v7, %s542_s11  ;;  %v419_v48 = vpack.c.bf16 %v253_v47, %v252_v46  ;;  %v51_v52 = vld [vmem:[#allocation2 + $0x40] sm:$0xff]  ;;  %v126_v6 = vadd.s32 24, %v631_v58  ;;  %v131_v7 = vand.u32 15, %v631_v58  ;;  %v44_v10 = vld [vmem:[#allocation2 + $0x8] sm:$0xff] }
  0x34   :  { %393 = vmatpush1.bf16.msra.mxu0 %v392_v21  ;;  %435 = vmatpush1.bf16.msra.mxu1 %v392_v21  ;;  %v380_v58 = vld [vmem:[%s719_s2] ss:$0 sm:$0xff]  ;;  %s509_s2 = scalar_lea.vmem %s368_s16, 512 }
  0x35   :  { %394 = vmatprep.subr.bf16.mxu0 %v544_v13  ;;  %424 = vmatprep.subr.bf16.mxu1 %v544_v13  ;;  %v152_v14 = vand.u32 15, %v126_v6  ;;  %vm646_vm6 = vcmp.ne.s32.totalorder %v131_v7, 0  ;;  %p510_p2 = scmp.ne.s32.totalorder %s368_s16, %s509_s2  ;;  %p515_p4 = scmp.lt.s32.totalorder %s509_s2, %s509_s2 }
  0x37   :  { %85 = vrot.lane.b32.xlu1 %v56_v11, %s541_s10  ;;  %81 = vrot.lane.b32.xlu0 %v48_v12, %s541_s10  ;;  %vm662_vm9 = vcmp.ne.s32.totalorder %v152_v14, 15  ;;  %p516_p5 = por %p515_p4, %p514_p3 }
  0x38   :  { %396 = vmatpush1.bf16.msra.mxu0 %v395_v24  ;;  %436 = vmatpush1.bf16.msra.mxu1 %v395_v24 }
  0x39   :  { %397 = vmatprep.subr.bf16.mxu0 %v544_v13  ;;  %425 = vmatprep.subr.bf16.mxu1 %v544_v13  ;;  %p517_p6 = pnand %p516_p5, %p510_p2 }
  0x3b   :  { %101 = vrot.lane.b32.xlu1 %v58_v19, %s543_s12  ;;  %97 = vrot.lane.b32.xlu0 %v50_v20, %s543_s12 }
  0x3c   :  { %399 = vmatpush1.bf16.msra.mxu0 %v398_v27  ;;  %437 = vmatpush1.bf16.msra.mxu1 %v398_v27 }
  0x3d   :  { %400 = vmatprep.subr.bf16.mxu0 %v544_v13  ;;  %426 = vmatprep.subr.bf16.mxu1 %v544_v13 }
  0x40   :  { %402 = vmatpush1.bf16.msra.mxu0 %v401_v30  ;;  %438 = vmatpush1.bf16.msra.mxu1 %v401_v30 }
  0x41   :  { %403 = vmatprep.subr.bf16.mxu0 %v544_v13  ;;  %427 = vmatprep.subr.bf16.mxu1 %v544_v13 }
  0x44   :  { %405 = vmatpush1.bf16.msra.mxu0 %v404_v33  ;;  %439 = vmatpush1.bf16.msra.mxu1 %v404_v33 }
  0x45   :  { %406 = vmatprep.subr.bf16.mxu0 %v544_v13  ;;  %428 = vmatprep.subr.bf16.mxu1 %v544_v13 }
  0x48   :  { %408 = vmatpush1.bf16.msra.mxu0 %v407_v36  ;;  %440 = vmatpush1.bf16.msra.mxu1 %v407_v36 }
  0x49   :  { %409 = vmatprep.subr.bf16.mxu0 %v544_v13  ;;  %429 = vmatprep.subr.bf16.mxu1 %v544_v13 }
  0x4c   :  { %411 = vmatpush1.bf16.msra.mxu0 %v410_v39  ;;  %441 = vmatpush1.bf16.msra.mxu1 %v410_v39 }
  0x4d   :  { %412 = vmatprep.subr.bf16.mxu0 %v544_v13  ;;  %430 = vmatprep.subr.bf16.mxu1 %v544_v13 }
  0x50   :  { %414 = vmatpush1.bf16.msra.mxu0 %v413_v42  ;;  %442 = vmatpush1.bf16.msra.mxu1 %v413_v42 }
  0x51   :  { %415 = vmatprep.subr.bf16.mxu0 %v544_v13  ;;  %431 = vmatprep.subr.bf16.mxu1 %v544_v13 }
  0x54   :  { %417 = vmatpush1.bf16.msra.mxu0 %v416_v45  ;;  %443 = vmatpush1.bf16.msra.mxu1 %v416_v45 }
  0x55   :  { %418 = vmatprep.subr.bf16.mxu0 %v544_v13  ;;  %432 = vmatprep.subr.bf16.mxu1 %v544_v13  ;;  %v138_v13 = vand.u32 15, %v124_v5 }
  0x57   :  { %vm658_vm8 = vcmp.ne.s32.totalorder %v138_v13, 15 }
  0x58   :  { %420 = vmatpush1.bf16.msra.mxu0 %v419_v48  ;;  %444 = vmatpush1.bf16.msra.mxu1 %v419_v48 }
  0x99   :  { %v80_v49 = vpop.permute.xlu1 %79  ;;  %v64_v50 = vpop.permute.xlu0 %63 }
  0x9a   :  { %v108_v56 = vsel %vm107_vm0, %v43_v51, %v64_v50 }
  0x9b   :  { %v113_v62 = vsel %vm112_vm1, %v108_v56, %v80_v49 }
  0x9d   :  { %v84_v54 = vpop.permute.xlu1 %83  ;;  %v68_v55 = vpop.permute.xlu0 %67 }
  0x9e   :  { %v110_v57 = vsel %vm107_vm0, %v51_v52, %v68_v55 }
  0x9f   :  { %v115_v60 = vsel %vm112_vm1, %v110_v57, %v84_v54 }
  0xa1   :  { %v100_v59 = vpop.permute.xlu1 %99  ;;  %v96_v61 = vpop.permute.xlu0 %95 }
  0xa2   :  { %v120_v63 = vsel %vm117_vm2, %v115_v60, %v100_v59  ;;  %v118_v0 = vsel %vm117_vm2, %v113_v62, %v96_v61 }
  0xa3   :  { %v455_v1 = vpack.i.bf16 %v120_v63, %v118_v0  ;;  %v185_v19 = vrot.slane %v120_v63, 7  ;;  %v198_v20 = vrot.slane %v120_v63, 1  ;;  %v183_v25 = vrot.slane %v118_v0, 7 }
  0xa4   :  { %v196_v26 = vrot.slane %v118_v0, 1 }
  0xa5   :  { %v70_v3 = vpop.permute.xlu1 %69  ;;  %v66_v4 = vpop.permute.xlu0 %65  ;;  %456 = vrot.lane.b32.xlu0 %v455_v1, %s545_s1 }
  0xa6   :  { %v111_v15 = vsel %vm107_vm0, %v52_v9, %v70_v3  ;;  %v109_v16 = vsel %vm107_vm0, %v44_v10, %v66_v4 }
  0xa9   :  { %v86_v11 = vpop.permute.xlu1 %85  ;;  %v82_v12 = vpop.permute.xlu0 %81 }
  0xaa   :  { %v116_v21 = vsel %vm112_vm1, %v111_v15, %v86_v11  ;;  %v114_v22 = vsel %vm112_vm1, %v109_v16, %v82_v12 }
  0xad   :  { %v102_v23 = vpop.permute.xlu1 %101  ;;  %v98_v24 = vpop.permute.xlu0 %97 }
  0xae   :  { %v121_v27 = vsel %vm117_vm2, %v116_v21, %v102_v23  ;;  %v119_v28 = vsel %vm117_vm2, %v114_v22, %v98_v24 }
  0xaf   :  { %v186_v29 = vrot.slane %v121_v27, 7  ;;  %v199_v30 = vrot.slane %v121_v27, 1  ;;  %v184_v31 = vrot.slane %v119_v28, 7  ;;  %v197_v32 = vrot.slane %v119_v28, 1 }
  0xb0   :  { %v460_v33 = vpack.i.bf16 %v121_v27, %v119_v28 }
  0xb1   :  { %v203_v36 = vsel %vm200_vm3, %v196_v26, %v197_v32  ;;  %v201_v37 = vsel %vm200_vm3, %v198_v20, %v199_v30  ;;  %v191_v38 = vsel %vm187_vm5, %v186_v29, %v183_v25  ;;  %v189_v39 = vsel %vm187_vm5, %v184_v31, %v185_v19 }
  0xb2   :  { %461 = vrot.lane.b32.xlu1 %v460_v33, %s545_s1  ;;  %381 = vmatprep.mubr.msk.f32.mxu0 %vm225_vm4, %v203_v36  ;;  %v192_v40 = vsel %vm646_vm6, %v191_v38, 0.0  ;;  %v194_v41 = vsel %vm650_vm7, %v189_v39, 0.0  ;;  %v202_v42 = vsel %vm200_vm3, %v197_v32, %v198_v20  ;;  %v204_v43 = vsel %vm200_vm3, %v199_v30, %v196_v26 }
  0xb3   :  { %383 = vmatprep.mubr.msk.f32.mxu1 %vm225_vm4, %v201_v37  ;;  %v206_v44 = vsel %vm658_vm8, %v202_v42, 0.0  ;;  %v208_v45 = vsel %vm662_vm9, %v204_v43, 0.0  ;;  %v190_v46 = vsel %vm187_vm5, %v183_v25, %v184_v31  ;;  %v188_v47 = vsel %vm187_vm5, %v185_v19, %v186_v29 }
 0x117   :  { %v457_v48 = vpop.permute.xlu0 %456 }
 0x118   :  { %v459_v49 = vunpack.i.h.bf16 %v457_v48  ;;  %v458_v50 = vunpack.i.l.bf16 %v457_v48 }
 0x11a   :  { %v226_v51 = vsel %vm225_vm4, %v192_v40, %v458_v50  ;;  %v228_v52 = vsel %vm225_vm4, %v194_v41, %v459_v49 }
 0x11b   :  { %338 = vmatmul.mubr.f32.vlgmr.msra.gmra.mrb[0].mxu0 %v226_v51  ;;  %348 = vmatmul.mubr.f32.vlgmr.msra.gmra.mrb[0].mxu1 %v228_v52 }
 0x11c   :  { %382 = vmatprep.mubr.msk.f32.mxu0 %vm225_vm4, %v206_v44  ;;  %384 = vmatprep.mubr.msk.f32.mxu1 %vm225_vm4, %v208_v45 }
 0x124   :  { %v462_v53 = vpop.permute.xlu1 %461 }
 0x125   :  { %v464_v54 = vunpack.i.h.bf16 %v462_v53  ;;  %v463_v55 = vunpack.i.l.bf16 %v462_v53 }
 0x127   :  { %v227_v56 = vsel %vm225_vm4, %v190_v46, %v463_v55  ;;  %v229_v57 = vsel %vm225_vm4, %v188_v47, %v464_v54 }
 0x128   :  { %343 = vmatmul.mubr.f32.gmra.mrb[2].mxu0 %v227_v56  ;;  %353 = vmatmul.mubr.f32.gmra.mrb[2].mxu1 %v229_v57 }
 0x1ee   :  { %v339_v59 = vpop.f32.mrb[0].mxu0  ;;  %v349_v60 = vpop.f32.mrb[0].mxu1 }
 0x1ef   :  { %v340_v61 = vadd.f32 %v380_v58, %v339_v59  ;;  %v350_v62 = vadd.f32 %v380_v58, %v349_v60  ;;  %v341_v63 = vpop.f32.mrb[1].mxu0  ;;  %v351_v0 = vpop.f32.mrb[1].mxu1 }
 0x1f1   :  { %358 = vst [vmem:[#allocation7] sm:$0xff] %v340_v61  ;;  %360 = vst [vmem:[#allocation7 + $0x10] sm:$0xff] %v350_v62 }
 0x1fb   :  { %v344_v1 = vpop.f32.mrb[2].mxu0  ;;  %v354_v2 = vpop.f32.mrb[2].mxu1 }
 0x1fc   :  { %v345_v3 = vadd.f32 %v380_v58, %v344_v1  ;;  %v355_v4 = vadd.f32 %v380_v58, %v354_v2  ;;  %v346_v5 = vpop.f32.mrb[3].mxu0  ;;  %v356_v6 = vpop.f32.mrb[3].mxu1 }
 0x1fe   :  { %359 = vst [vmem:[#allocation7 + $0x8] sm:$0xff] %v345_v3  ;;  %361 = vst [vmem:[#allocation7 + $0x18] sm:$0xff] %v355_v4 }
 0x1ff   :  { %520 = shalt.err (!%p517_p6)
}
 0x200   :  { %s521_s19 = scalar_lea.hbm %s720_s3, 512 }
 0x201   :  { %p522_p7 = scmp.ne.s32.totalorder %s720_s3, %s521_s19  ;;  %p525_p8 = scmp.lt.u32.totalorder %s521_s19, %s720_s3 }
 0x203   :  { %p527_p9 = pnand %p525_p8, %p522_p7 }
 0x205   :  { %530 = shalt.err (!%p527_p9)
}
 0x206   :  { %373 = dma.vmem_to_hbm [thread:$0]  %s368_s16, 512, %s720_s3, [#allocation4], %s538_s22, %s538_s22, %s539_s23  }
 0x207   :  { %535 = dma.done.wait [#allocation4], 512  }
 0x208   :  { %536 = vsyncadd [#allocation4], 4294966784 }
 0x209   :  { %377 = vsyncpa [#allocation3], 1 }
 0x20a   :  { %378 = vsyncpa [#allocation6], 1 }
 0x20b   :  { %379 = vsyncpa [#allocation4], 1 }

</bundles_post_ra>
